<compile_context>
chip_gen: v7x
topology: tpu7x:2x2x1
jax: 0.10.0
libtpu: 0.0.40
codegen_flags: <defaults>
</compile_context>

<pallas_src>
import functools

import jax
import jax.numpy as jnp
from jax.experimental import pallas as pl
from jax.experimental.pallas import tpu as pltpu

NUM_HIDDEN = 5
BN_EPS = 1e-5
NUM_LABELS_PADDED = 128  # lane-dense output width


def hlnet_kernel(x_ref, w_in_ref, b_in_ref, w_hid_ref, b_hid_ref,
                 bn4_scale_ref, bn4_shift_ref, w_out_ref, b_out_ref,
                 w_top_ref, b_top_ref, o_ref):
    bf16 = jnp.bfloat16

    # hidden layer 0: Linear -> ReLU   (BN_0 is folded into w_hid[0]/b_hid[0])
    h = jnp.dot(x_ref[...].astype(bf16), w_in_ref[...],
                preferred_element_type=jnp.float32) + b_in_ref[...]
    h = jnp.maximum(h, 0.0)

    # hidden layers 1..NUM_HIDDEN-1 (BN_i of the previous layer already folded into W/b)
    for i in range(NUM_HIDDEN - 1):
        h = jnp.dot(h.astype(bf16), w_hid_ref[i],
                    preferred_element_type=jnp.float32) + b_hid_ref[i]
        h = jnp.maximum(h, 0.0)

    # last BatchNorm affine (cannot be folded: the Sequential's trailing ReLU sits
    # between it and the output Linear), then that trailing ReLU.
    h = h * bn4_scale_ref[...] + bn4_shift_ref[...]
    h = jnp.maximum(h, 0.0)

    # base output projection + F.relu
    h = jnp.dot(h.astype(bf16), w_out_ref[...],
                preferred_element_type=jnp.float32) + b_out_ref[...]
    h = jnp.maximum(h, 0.0)

    # top classifier head (lane-dense, padded to 128 labels; padded lanes are exactly 0)
    o_ref[...] = jnp.dot(h.astype(bf16), w_top_ref[...],
                         preferred_element_type=jnp.float32) + b_top_ref[...]


def hlnet_forward(x, prep, *, tb=8):
    """Run the fused HLNet kernel.  `prep` comes from prepare_params()."""
    B, input_dim = x.shape
    inter_dim = prep["w_in"].shape[1]
    out_dim = prep["w_out"].shape[1]
    num_labels = prep["num_labels"]
    nlp = prep["w_top"].shape[1]

    # Pad batch to a multiple of the batch tile.
    Bp = pl.cdiv(B, tb) * tb
    if Bp != B:
        x = jnp.pad(x, ((0, Bp - B), (0, 0)))

    args = (x,
            prep["w_in"], prep["b_in"],
            prep["w_hid"], prep["b_hid"],
            prep["bn4_scale"], prep["bn4_shift"],
            prep["w_out"], prep["b_out"],
            prep["w_top"], prep["b_top"])

    def const_spec(a):
        nd = a.ndim
        return pl.BlockSpec(a.shape, lambda i, _nd=nd: (0,) * _nd)

    in_specs = [pl.BlockSpec((tb, input_dim), lambda i: (i, 0))]
    in_specs += [const_spec(a) for a in args[1:]]
    out_spec = pl.BlockSpec((tb, nlp), lambda i: (i, 0))

    # Advisory cost estimate for XLA scheduling.
    flops = 2 * Bp * (input_dim * inter_dim
                      + (NUM_HIDDEN - 1) * inter_dim * inter_dim
                      + inter_dim * out_dim
                      + out_dim * nlp)
    bytes_accessed = sum(int(a.size) * a.dtype.itemsize for a in args) \
        + Bp * nlp * 4
    ce = pl.CostEstimate(flops=int(flops), transcendentals=0,
                         bytes_accessed=int(bytes_accessed))

    out = pl.pallas_call(
        hlnet_kernel,
        out_shape=jax.ShapeDtypeStruct((Bp, nlp), jnp.float32),
        grid_spec=pltpu.PrefetchScalarGridSpec(
            num_scalar_prefetch=0,
            grid=(Bp // tb,),
            in_specs=in_specs,
            out_specs=out_spec,
        ),
        compiler_params=pltpu.CompilerParams(
            dimension_semantics=("parallel",)),
        cost_estimate=ce,
    )(*args)

    return out[:B, :num_labels]


def prepare_params(raw):
    """Fold BN_0..BN_3 into the following Linear, pad the top head to 128 lanes,
    and cast all weight matrices to bf16 (biases / BN params stay f32)."""
    bf16 = jnp.bfloat16
    s = raw["bn_scale"]   # (NUM_HIDDEN, 1, inter)
    t = raw["bn_shift"]   # (NUM_HIDDEN, 1, inter)

    w_hid_f, b_hid_f = [], []
    for i in range(NUM_HIDDEN - 1):
        # (h * s_i + t_i) @ W = h @ (s_i^T * W) + (t_i @ W)
        w_hid_f.append(s[i][0][:, None] * raw["w_hid"][i])
        b_hid_f.append(raw["b_hid"][i] + t[i] @ raw["w_hid"][i])
    w_hid_f = jnp.stack(w_hid_f)
    b_hid_f = jnp.stack(b_hid_f)

    num_labels = raw["w_top"].shape[1]
    pad = NUM_LABELS_PADDED - num_labels
    w_top_p = jnp.pad(raw["w_top"], ((0, 0), (0, pad)))
    b_top_p = jnp.pad(raw["b_top"], ((0, 0), (0, pad)))

    return {
        "w_in": raw["w_in"].astype(bf16),
        "b_in": raw["b_in"],
        "w_hid": w_hid_f.astype(bf16),
        "b_hid": b_hid_f,
        "bn4_scale": s[NUM_HIDDEN - 1],
        "bn4_shift": t[NUM_HIDDEN - 1],
        "w_out": raw["w_out"].astype(bf16),
        "b_out": raw["b_out"],
        "w_top": w_top_p.astype(bf16),
        "b_top": b_top_p,
        "num_labels": num_labels,
    }


def hlnet_ref_prepared(x, p):
    """Pure-JAX mirror of the kernel math on the prepared (folded, bf16) params."""
    bf16 = jnp.bfloat16
    h = jnp.dot(x.astype(bf16), p["w_in"],
                preferred_element_type=jnp.float32) + p["b_in"]
    h = jnp.maximum(h, 0.0)
    for i in range(NUM_HIDDEN - 1):
        h = jnp.dot(h.astype(bf16), p["w_hid"][i],
                    preferred_element_type=jnp.float32) + p["b_hid"][i]
        h = jnp.maximum(h, 0.0)
    h = h * p["bn4_scale"] + p["bn4_shift"]
    h = jnp.maximum(h, 0.0)
    h = jnp.maximum(jnp.dot(h.astype(bf16), p["w_out"],
                            preferred_element_type=jnp.float32) + p["b_out"], 0.0)
    out = jnp.dot(h.astype(bf16), p["w_top"],
                  preferred_element_type=jnp.float32) + p["b_top"]
    return out[:, :p["num_labels"]]


def hlnet_ref_f32(x, p):
    """Unfolded full-f32 eval-mode reference (semantic ground truth)."""
    h = jnp.maximum(x @ p["w_in"] + p["b_in"], 0.0)
    h = h * p["bn_scale"][0] + p["bn_shift"][0]
    for i in range(NUM_HIDDEN - 1):
        h = jnp.maximum(h @ p["w_hid"][i] + p["b_hid"][i], 0.0)
        h = h * p["bn_scale"][i + 1] + p["bn_shift"][i + 1]
    h = jnp.maximum(h, 0.0)
    h = jnp.maximum(h @ p["w_out"] + p["b_out"], 0.0)
    return h @ p["w_top"] + p["b_top"]


def init_params(key, input_dim, inter_dim, out_dim, num_labels):
    ks = jax.random.split(key, 12)
    p = {}
    p["w_in"] = 0.05 * jax.random.normal(ks[0], (input_dim, inter_dim), jnp.float32)
    p["b_in"] = 0.05 * jax.random.normal(ks[1], (1, inter_dim), jnp.float32)
    p["w_hid"] = 0.05 * jax.random.normal(
        ks[2], (NUM_HIDDEN - 1, inter_dim, inter_dim), jnp.float32)
    p["b_hid"] = 0.05 * jax.random.normal(
        ks[3], (NUM_HIDDEN - 1, 1, inter_dim), jnp.float32)
    # BatchNorm1d (eval mode) for each of the NUM_HIDDEN BN layers
    gamma = 1.0 + 0.1 * jax.random.normal(ks[4], (NUM_HIDDEN, 1, inter_dim), jnp.float32)
    beta = 0.1 * jax.random.normal(ks[5], (NUM_HIDDEN, 1, inter_dim), jnp.float32)
    r_mean = 0.1 * jax.random.normal(ks[6], (NUM_HIDDEN, 1, inter_dim), jnp.float32)
    r_var = jax.random.uniform(ks[7], (NUM_HIDDEN, 1, inter_dim), jnp.float32,
                               minval=0.5, maxval=1.5)
    scale = gamma / jnp.sqrt(r_var + BN_EPS)
    p["bn_scale"] = scale
    p["bn_shift"] = beta - r_mean * scale
    p["w_out"] = 0.05 * jax.random.normal(ks[8], (inter_dim, out_dim), jnp.float32)
    p["b_out"] = 0.05 * jax.random.normal(ks[9], (1, out_dim), jnp.float32)
    p["w_top"] = 0.05 * jax.random.normal(ks[10], (out_dim, num_labels), jnp.float32)
    p["b_top"] = 0.05 * jax.random.normal(ks[11], (1, num_labels), jnp.float32)
    return p


if __name__ == "__main__":
    # Small shapes consistent with the module (original: inter_dim=800, num_hidden=5,
    # out_dim=64, num_labels=7).  inter_dim kept lane-aligned (128); at the real 800 it
    # should be zero-padded to 896 by the caller.
    B, INPUT_DIM, INTER_DIM, OUT_DIM, NUM_LABELS = 16, 16, 128, 64, 7
    TB = 8  # batch tile; use a much larger tile (e.g. 256) for real batch sizes

    key = jax.random.PRNGKey(0)
    k_x, k_p = jax.random.split(key)
    x = jax.random.normal(k_x, (B, INPUT_DIM), jnp.float32)
    raw = init_params(k_p, INPUT_DIM, INTER_DIM, OUT_DIM, NUM_LABELS)
    prep = prepare_params(raw)

    out = jax.block_until_ready(hlnet_forward(x, prep, tb=TB))
    ref_bf16 = jax.block_until_ready(hlnet_ref_prepared(x, prep))
    ref_f32 = jax.block_until_ready(hlnet_ref_f32(x, raw))

    assert out.shape == (B, NUM_LABELS)
    # Tight check against the exact (folded, bf16) math the kernel performs.
    assert jnp.allclose(out, ref_bf16, atol=1e-3, rtol=1e-3)
    # Looser check against the unfolded full-f32 eval-mode model (bf16 rounding error).
    assert jnp.allclose(out, ref_f32, atol=5e-2, rtol=5e-2)
    print("KERNEL_OK")
</pallas_src>

<mosaic_0001>
module attributes {stable_mosaic.version = 11 : i64} {
  func.func @hlnet_kernel(%arg0: i32, %arg1: memref<8x16xf32, #tpu.memory_space<vmem>>, %arg2: memref<16x128xbf16, #tpu.memory_space<vmem>>, %arg3: memref<1x128xf32, #tpu.memory_space<vmem>>, %arg4: memref<4x128x128xbf16, #tpu.memory_space<vmem>>, %arg5: memref<4x1x128xf32, #tpu.memory_space<vmem>>, %arg6: memref<1x128xf32, #tpu.memory_space<vmem>>, %arg7: memref<1x128xf32, #tpu.memory_space<vmem>>, %arg8: memref<128x64xbf16, #tpu.memory_space<vmem>>, %arg9: memref<1x64xf32, #tpu.memory_space<vmem>>, %arg10: memref<64x128xbf16, #tpu.memory_space<vmem>>, %arg11: memref<1x128xf32, #tpu.memory_space<vmem>>, %arg12: memref<8x128xf32, #tpu.memory_space<vmem>>) attributes {dimension_semantics = [#tpu.dimension_semantics<parallel>], iteration_bounds = array<i64: 2>, scalar_prefetch = 0 : i64, scratch_operands = 0 : i64, tpu.core_type = #tpu.core_type<tc>, window_params = [{transform_indices = @transform_0, window_bounds = array<i64: 8, 16>}, {pipeline_mode = #tpu.pipeline_mode<synchronous>, transform_indices = @transform_1, window_bounds = array<i64: 16, 128>}, {pipeline_mode = #tpu.pipeline_mode<synchronous>, transform_indices = @transform_2, window_bounds = array<i64: 1, 128>}, {pipeline_mode = #tpu.pipeline_mode<synchronous>, transform_indices = @transform_3, window_bounds = array<i64: 4, 128, 128>}, {pipeline_mode = #tpu.pipeline_mode<synchronous>, transform_indices = @transform_4, window_bounds = array<i64: 4, 1, 128>}, {pipeline_mode = #tpu.pipeline_mode<synchronous>, transform_indices = @transform_5, window_bounds = array<i64: 1, 128>}, {pipeline_mode = #tpu.pipeline_mode<synchronous>, transform_indices = @transform_6, window_bounds = array<i64: 1, 128>}, {pipeline_mode = #tpu.pipeline_mode<synchronous>, transform_indices = @transform_7, window_bounds = array<i64: 128, 64>}, {pipeline_mode = #tpu.pipeline_mode<synchronous>, transform_indices = @transform_8, window_bounds = array<i64: 1, 64>}, {pipeline_mode = #tpu.pipeline_mode<synchronous>, transform_indices = @transform_9, window_bounds = array<i64: 64, 128>}, {pipeline_mode = #tpu.pipeline_mode<synchronous>, transform_indices = @transform_10, window_bounds = array<i64: 1, 128>}, {transform_indices = @transform_11, window_bounds = array<i64: 8, 128>}]} {
    %c0 = arith.constant 0 : index
    %c0_0 = arith.constant 0 : index
    %0 = vector.load %arg1[%c0, %c0_0] : memref<8x16xf32, #tpu.memory_space<vmem>>, vector<8x16xf32>
    %1 = arith.truncf %0 : vector<8x16xf32> to vector<8x16xbf16>
    %c0_1 = arith.constant 0 : index
    %c0_2 = arith.constant 0 : index
    %2 = vector.load %arg2[%c0_1, %c0_2] : memref<16x128xbf16, #tpu.memory_space<vmem>>, vector<16x128xbf16>
    %cst = arith.constant dense<0.000000e+00> : vector<8x128xf32>
    %3 = tpu.matmul %1, %2, %cst {dimension_numbers = #tpu.dot_dimension_numbers<[1], [0], [0], [1], [0, 0, 1, 1], [], []>} : vector<8x16xbf16>, vector<16x128xbf16>, vector<8x128xf32> -> vector<8x128xf32>
    %c0_3 = arith.constant 0 : index
    %c0_4 = arith.constant 0 : index
    %4 = vector.load %arg3[%c0_3, %c0_4] : memref<1x128xf32, #tpu.memory_space<vmem>>, vector<1x128xf32>
    %5 = vector.broadcast %4 : vector<1x128xf32> to vector<8x128xf32>
    %6 = arith.addf %3, %5 : vector<8x128xf32>
    %cst_5 = arith.constant 0.000000e+00 : f32
    %7 = vector.broadcast %cst_5 : f32 to vector<8x128xf32>
    %8 = arith.maximumf %6, %7 : vector<8x128xf32>
    %9 = arith.truncf %8 : vector<8x128xf32> to vector<8x128xbf16>
    %c0_6 = arith.constant 0 : index
    %c0_7 = arith.constant 0 : index
    %c0_8 = arith.constant 0 : index
    %10 = vector.load %arg4[%c0_6, %c0_7, %c0_8] : memref<4x128x128xbf16, #tpu.memory_space<vmem>>, vector<1x128x128xbf16>
    %11 = vector.shape_cast %10 : vector<1x128x128xbf16> to vector<128x128xbf16>
    %cst_9 = arith.constant dense<0.000000e+00> : vector<8x128xf32>
    %12 = tpu.matmul %9, %11, %cst_9 {dimension_numbers = #tpu.dot_dimension_numbers<[1], [0], [0], [1], [0, 0, 1, 1], [], []>} : vector<8x128xbf16>, vector<128x128xbf16>, vector<8x128xf32> -> vector<8x128xf32>
    %c0_10 = arith.constant 0 : index
    %c0_11 = arith.constant 0 : index
    %c0_12 = arith.constant 0 : index
    %13 = vector.load %arg5[%c0_10, %c0_11, %c0_12] : memref<4x1x128xf32, #tpu.memory_space<vmem>>, vector<1x1x128xf32>
    %14 = vector.shape_cast %13 : vector<1x1x128xf32> to vector<1x128xf32>
    %15 = vector.broadcast %14 : vector<1x128xf32> to vector<8x128xf32>
    %16 = arith.addf %12, %15 : vector<8x128xf32>
    %cst_13 = arith.constant 0.000000e+00 : f32
    %17 = vector.broadcast %cst_13 : f32 to vector<8x128xf32>
    %18 = arith.maximumf %16, %17 : vector<8x128xf32>
    %19 = arith.truncf %18 : vector<8x128xf32> to vector<8x128xbf16>
    %c1 = arith.constant 1 : index
    %c0_14 = arith.constant 0 : index
    %c0_15 = arith.constant 0 : index
    %20 = vector.load %arg4[%c1, %c0_14, %c0_15] : memref<4x128x128xbf16, #tpu.memory_space<vmem>>, vector<1x128x128xbf16>
    %21 = vector.shape_cast %20 : vector<1x128x128xbf16> to vector<128x128xbf16>
    %cst_16 = arith.constant dense<0.000000e+00> : vector<8x128xf32>
    %22 = tpu.matmul %19, %21, %cst_16 {dimension_numbers = #tpu.dot_dimension_numbers<[1], [0], [0], [1], [0, 0, 1, 1], [], []>} : vector<8x128xbf16>, vector<128x128xbf16>, vector<8x128xf32> -> vector<8x128xf32>
    %c1_17 = arith.constant 1 : index
    %c0_18 = arith.constant 0 : index
    %c0_19 = arith.constant 0 : index
    %23 = vector.load %arg5[%c1_17, %c0_18, %c0_19] : memref<4x1x128xf32, #tpu.memory_space<vmem>>, vector<1x1x128xf32>
    %24 = vector.shape_cast %23 : vector<1x1x128xf32> to vector<1x128xf32>
    %25 = vector.broadcast %24 : vector<1x128xf32> to vector<8x128xf32>
    %26 = arith.addf %22, %25 : vector<8x128xf32>
    %cst_20 = arith.constant 0.000000e+00 : f32
    %27 = vector.broadcast %cst_20 : f32 to vector<8x128xf32>
    %28 = arith.maximumf %26, %27 : vector<8x128xf32>
    %29 = arith.truncf %28 : vector<8x128xf32> to vector<8x128xbf16>
    %c2 = arith.constant 2 : index
    %c0_21 = arith.constant 0 : index
    %c0_22 = arith.constant 0 : index
    %30 = vector.load %arg4[%c2, %c0_21, %c0_22] : memref<4x128x128xbf16, #tpu.memory_space<vmem>>, vector<1x128x128xbf16>
    %31 = vector.shape_cast %30 : vector<1x128x128xbf16> to vector<128x128xbf16>
    %cst_23 = arith.constant dense<0.000000e+00> : vector<8x128xf32>
    %32 = tpu.matmul %29, %31, %cst_23 {dimension_numbers = #tpu.dot_dimension_numbers<[1], [0], [0], [1], [0, 0, 1, 1], [], []>} : vector<8x128xbf16>, vector<128x128xbf16>, vector<8x128xf32> -> vector<8x128xf32>
    %c2_24 = arith.constant 2 : index
    %c0_25 = arith.constant 0 : index
    %c0_26 = arith.constant 0 : index
    %33 = vector.load %arg5[%c2_24, %c0_25, %c0_26] : memref<4x1x128xf32, #tpu.memory_space<vmem>>, vector<1x1x128xf32>
    %34 = vector.shape_cast %33 : vector<1x1x128xf32> to vector<1x128xf32>
    %35 = vector.broadcast %34 : vector<1x128xf32> to vector<8x128xf32>
    %36 = arith.addf %32, %35 : vector<8x128xf32>
    %cst_27 = arith.constant 0.000000e+00 : f32
    %37 = vector.broadcast %cst_27 : f32 to vector<8x128xf32>
    %38 = arith.maximumf %36, %37 : vector<8x128xf32>
    %39 = arith.truncf %38 : vector<8x128xf32> to vector<8x128xbf16>
    %c3 = arith.constant 3 : index
    %c0_28 = arith.constant 0 : index
    %c0_29 = arith.constant 0 : index
    %40 = vector.load %arg4[%c3, %c0_28, %c0_29] : memref<4x128x128xbf16, #tpu.memory_space<vmem>>, vector<1x128x128xbf16>
    %41 = vector.shape_cast %40 : vector<1x128x128xbf16> to vector<128x128xbf16>
    %cst_30 = arith.constant dense<0.000000e+00> : vector<8x128xf32>
    %42 = tpu.matmul %39, %41, %cst_30 {dimension_numbers = #tpu.dot_dimension_numbers<[1], [0], [0], [1], [0, 0, 1, 1], [], []>} : vector<8x128xbf16>, vector<128x128xbf16>, vector<8x128xf32> -> vector<8x128xf32>
    %c3_31 = arith.constant 3 : index
    %c0_32 = arith.constant 0 : index
    %c0_33 = arith.constant 0 : index
    %43 = vector.load %arg5[%c3_31, %c0_32, %c0_33] : memref<4x1x128xf32, #tpu.memory_space<vmem>>, vector<1x1x128xf32>
    %44 = vector.shape_cast %43 : vector<1x1x128xf32> to vector<1x128xf32>
    %45 = vector.broadcast %44 : vector<1x128xf32> to vector<8x128xf32>
    %46 = arith.addf %42, %45 : vector<8x128xf32>
    %cst_34 = arith.constant 0.000000e+00 : f32
    %47 = vector.broadcast %cst_34 : f32 to vector<8x128xf32>
    %48 = arith.maximumf %46, %47 : vector<8x128xf32>
    %c0_35 = arith.constant 0 : index
    %c0_36 = arith.constant 0 : index
    %49 = vector.load %arg6[%c0_35, %c0_36] : memref<1x128xf32, #tpu.memory_space<vmem>>, vector<1x128xf32>
    %50 = vector.broadcast %49 : vector<1x128xf32> to vector<8x128xf32>
    %51 = arith.mulf %48, %50 : vector<8x128xf32>
    %c0_37 = arith.constant 0 : index
    %c0_38 = arith.constant 0 : index
    %52 = vector.load %arg7[%c0_37, %c0_38] : memref<1x128xf32, #tpu.memory_space<vmem>>, vector<1x128xf32>
    %53 = vector.broadcast %52 : vector<1x128xf32> to vector<8x128xf32>
    %54 = arith.addf %51, %53 : vector<8x128xf32>
    %cst_39 = arith.constant 0.000000e+00 : f32
    %55 = vector.broadcast %cst_39 : f32 to vector<8x128xf32>
    %56 = arith.maximumf %54, %55 : vector<8x128xf32>
    %57 = arith.truncf %56 : vector<8x128xf32> to vector<8x128xbf16>
    %c0_40 = arith.constant 0 : index
    %c0_41 = arith.constant 0 : index
    %58 = vector.load %arg8[%c0_40, %c0_41] : memref<128x64xbf16, #tpu.memory_space<vmem>>, vector<128x64xbf16>
    %cst_42 = arith.constant dense<0.000000e+00> : vector<8x64xf32>
    %59 = tpu.matmul %57, %58, %cst_42 {dimension_numbers = #tpu.dot_dimension_numbers<[1], [0], [0], [1], [0, 0, 1, 1], [], []>} : vector<8x128xbf16>, vector<128x64xbf16>, vector<8x64xf32> -> vector<8x64xf32>
    %c0_43 = arith.constant 0 : index
    %c0_44 = arith.constant 0 : index
    %60 = vector.load %arg9[%c0_43, %c0_44] : memref<1x64xf32, #tpu.memory_space<vmem>>, vector<1x64xf32>
    %61 = vector.broadcast %60 : vector<1x64xf32> to vector<8x64xf32>
    %62 = arith.addf %59, %61 : vector<8x64xf32>
    %cst_45 = arith.constant 0.000000e+00 : f32
    %63 = vector.broadcast %cst_45 : f32 to vector<8x64xf32>
    %64 = arith.maximumf %62, %63 : vector<8x64xf32>
    %65 = arith.truncf %64 : vector<8x64xf32> to vector<8x64xbf16>
    %c0_46 = arith.constant 0 : index
    %c0_47 = arith.constant 0 : index
    %66 = vector.load %arg10[%c0_46, %c0_47] : memref<64x128xbf16, #tpu.memory_space<vmem>>, vector<64x128xbf16>
    %cst_48 = arith.constant dense<0.000000e+00> : vector<8x128xf32>
    %67 = tpu.matmul %65, %66, %cst_48 {dimension_numbers = #tpu.dot_dimension_numbers<[1], [0], [0], [1], [0, 0, 1, 1], [], []>} : vector<8x64xbf16>, vector<64x128xbf16>, vector<8x128xf32> -> vector<8x128xf32>
    %c0_49 = arith.constant 0 : index
    %c0_50 = arith.constant 0 : index
    %68 = vector.load %arg11[%c0_49, %c0_50] : memref<1x128xf32, #tpu.memory_space<vmem>>, vector<1x128xf32>
    %69 = vector.broadcast %68 : vector<1x128xf32> to vector<8x128xf32>
    %70 = arith.addf %67, %69 : vector<8x128xf32>
    %c0_51 = arith.constant 0 : index
    %c0_52 = arith.constant 0 : index
    %71 = vector.load %arg12[%c0_51, %c0_52] : memref<8x128xf32, #tpu.memory_space<vmem>>, vector<8x128xf32>
    tpu.vector_store %arg12[%c0_51, %c0_52], %70 {strides = array<i32>} : memref<8x128xf32, #tpu.memory_space<vmem>>, vector<8x128xf32>,
    return
  }
  func.func @transform_0(%arg0: i32) -> (i32, i32) {
    %c0_i32 = arith.constant 0 : i32
    %c0_i32_0 = arith.constant 0 : i32
    return %arg0, %c0_i32 : i32, i32
  }
  func.func @transform_1(%arg0: i32) -> (i32, i32) {
    %c0_i32 = arith.constant 0 : i32
    %c0_i32_0 = arith.constant 0 : i32
    %c0_i32_1 = arith.constant 0 : i32
    return %c0_i32, %c0_i32_0 : i32, i32
  }
  func.func @transform_2(%arg0: i32) -> (i32, i32) {
    %c0_i32 = arith.constant 0 : i32
    %c0_i32_0 = arith.constant 0 : i32
    %c0_i32_1 = arith.constant 0 : i32
    return %c0_i32, %c0_i32_0 : i32, i32
  }
  func.func @transform_3(%arg0: i32) -> (i32, i32, i32) {
    %c0_i32 = arith.constant 0 : i32
    %c0_i32_0 = arith.constant 0 : i32
    %c0_i32_1 = arith.constant 0 : i32
    %c0_i32_2 = arith.constant 0 : i32
    return %c0_i32, %c0_i32_0, %c0_i32_1 : i32, i32, i32
  }
  func.func @transform_4(%arg0: i32) -> (i32, i32, i32) {
    %c0_i32 = arith.constant 0 : i32
    %c0_i32_0 = arith.constant 0 : i32
    %c0_i32_1 = arith.constant 0 : i32
    %c0_i32_2 = arith.constant 0 : i32
    return %c0_i32, %c0_i32_0, %c0_i32_1 : i32, i32, i32
  }
  func.func @transform_5(%arg0: i32) -> (i32, i32) {
    %c0_i32 = arith.constant 0 : i32
    %c0_i32_0 = arith.constant 0 : i32
    %c0_i32_1 = arith.constant 0 : i32
    return %c0_i32, %c0_i32_0 : i32, i32
  }
  func.func @transform_6(%arg0: i32) -> (i32, i32) {
    %c0_i32 = arith.constant 0 : i32
    %c0_i32_0 = arith.constant 0 : i32
    %c0_i32_1 = arith.constant 0 : i32
    return %c0_i32, %c0_i32_0 : i32, i32
  }
  func.func @transform_7(%arg0: i32) -> (i32, i32) {
    %c0_i32 = arith.constant 0 : i32
    %c0_i32_0 = arith.constant 0 : i32
    %c0_i32_1 = arith.constant 0 : i32
    return %c0_i32, %c0_i32_0 : i32, i32
  }
  func.func @transform_8(%arg0: i32) -> (i32, i32) {
    %c0_i32 = arith.constant 0 : i32
    %c0_i32_0 = arith.constant 0 : i32
    %c0_i32_1 = arith.constant 0 : i32
    return %c0_i32, %c0_i32_0 : i32, i32
  }
  func.func @transform_9(%arg0: i32) -> (i32, i32) {
    %c0_i32 = arith.constant 0 : i32
    %c0_i32_0 = arith.constant 0 : i32
    %c0_i32_1 = arith.constant 0 : i32
    return %c0_i32, %c0_i32_0 : i32, i32
  }
  func.func @transform_10(%arg0: i32) -> (i32, i32) {
    %c0_i32 = arith.constant 0 : i32
    %c0_i32_0 = arith.constant 0 : i32
    %c0_i32_1 = arith.constant 0 : i32
    return %c0_i32, %c0_i32_0 : i32, i32
  }
  func.func @transform_11(%arg0: i32) -> (i32, i32) {
    %c0_i32 = arith.constant 0 : i32
    %c0_i32_0 = arith.constant 0 : i32
    return %arg0, %c0_i32 : i32, i32
  }
}

</mosaic_0001>

<bundles_post_ra>
// kernel: tpu_custom_call.1
= control target key start
LH: loop header
LB: loop body
LE: loop exit
PB: predicated region body
PF: predicated region fallthrough
CT: control target
= control target key end

     0   :  { %16 = vsyncpa [#allocation3], 0  ;;  %s1980_s0 = inlined_call_operand.vmem [shape: f32[16,16], index: 0, kind: input, shape index: {}]   ;;  %s1981_s1 = inlined_call_operand.vmem [shape: bf16[16,128], index: 1, kind: input, shape index: {}]   ;;  %s1982_s2 = inlined_call_operand.vmem [shape: f32[1,128], index: 2, kind: input, shape index: {}]   ;;  %s1983_s3 = inlined_call_operand.hbm [shape: bf16[4,128,128], index: 3, kind: input, shape index: {}]   ;;  %s1984_s4 = inlined_call_operand.vmem [shape: f32[4,1,128], index: 4, kind: input, shape index: {}]   ;;  %s1985_s5 = inlined_call_operand.vmem [shape: f32[1,128], index: 5, kind: input, shape index: {}]   ;;  %s1986_s6 = inlined_call_operand.vmem [shape: f32[1,128], index: 6, kind: input, shape index: {}]   ;;  %s1987_s7 = inlined_call_operand.vmem [shape: bf16[128,64], index: 7, kind: input, shape index: {}]   ;;  %s1988_s8 = inlined_call_operand.vmem [shape: f32[1,64], index: 8, kind: input, shape index: {}]   ;;  %s1989_s9 = inlined_call_operand.vmem [shape: bf16[64,128], index: 9, kind: input, shape index: {}]   ;;  %s1990_s10 = inlined_call_operand.vmem [shape: f32[1,128], index: 10, kind: input, shape index: {}]   ;;  %s1991_s11 = inlined_call_operand.hbm [shape: f32[16,128], index: 11, kind: output, shape index: {}]  }
   0x1   :  { %17 = vsyncpa [#allocation4], 0 }
   0x2   :  { %19 = vsyncpa [#allocation4 + $0x1], 0  ;;  %s1720_s17 = smov 0   ;;  %s1722_s18 = smov 0  }
   0x3   :  { %s1724_s19 = smov 0   ;;  %s1726_s20 = smov 0  }
   0x4 LB: > { %s1741_s21 = sadd.s32 4294967295, %s1652_s20   ;;  %s1218_s22 = sadd.s32 4294967294, %s1652_s20   ;;  %s1652_s20 = sphi %s1726_s20, %s2009_s20   ;;  %s1648_s19 = sphi %s1724_s19, %s2008_s19   ;;  %s1644_s18 = sphi %s1722_s18, %s2007_s18   ;;  %s1640_s17 = sphi %s1720_s17, %s2006_s17  }
   0x5   : > { %s1745_s23 = sadd.s32 1, %s1652_s20   ;;  %s268_s24 = sadd.s32 1, %s1648_s19 }
   0x6   : > { %s265_s25 = ssub.s32 %s1652_s20, %s1745_s23  ;;  %p278_p0 = scmp.ne.s32.totalorder %s1648_s19, %s1644_s18 }
   0x7   : > { %p266_p1 = scmp.eq.s32.totalorder %s265_s25, 0  ;;  %p279_p2 = scmp.eq.s32.totalorder %s1741_s21, 1 }
   0x8   : > { %p284_p3 = scmp.ne.s32.totalorder %s1644_s18, %s1640_s17  ;;  %p285_p4 = scmp.eq.s32.totalorder %s1218_s22, 1 }
   0x9   : > { %s1756_s26 = scalar_select %p266_p1, %s1648_s19, %s268_s24  }
   0xa   : > { %p1758_p5 = por %p279_p2, %p278_p0  ;;  %p1762_p6 = por %p285_p4, %p284_p3 }
   0xb   : > { %1995 = sst [smem:[#allocation8_spill]] %s1756_s26  ;;  %p1219_p7 = scmp.ge.s32.totalorder %s1652_s20, 1 }
   0xc   : > { %s1996_s27 = scalar_select %p1758_p5, 1, 0 }
   0xd   : > { %s1997_s28 = scalar_select %p1762_p6, 1, 0 }
   0xe   : > { %p292_p8 = scmp.lt.s32.totalorder %s1652_s20, 3  ;;  %p1992_p9 = scmp.eq.s32.totalorder %s1741_s21, 0 }
   0xf   : > { %s1654_s30 = smov [#allocation2]   ;;  %s1558_s16 = scalar_lea.hbm %s1983_s3, 4096 }
  0x10   : > { %p1769_p10 = pnand %p1219_p7, %p292_p8  ;;  %s310_s12 = sshll.u32 %s1654_s30, 4  ;;  %s311_s12 = int_to_ptr.vmem [resolvable:$true] %s310_s12 }
  0x11   : > { %p1559_p13 = scmp.ne.s32.totalorder %s1983_s3, %s1558_s16  ;;  %p1565_p3 = scmp.lt.u32.totalorder %s1558_s16, %s1983_s3 }
  0x12   : > { %s1998_s29 = scalar_select %p1769_p10, 1, 0 }
  0x13   : > { %p1465_p11 = pneg %p1769_p10 }
  0x15   : > { %p1777_p12 = pnand %p1992_p9, %p1465_p11 }
  0x17   : > { %p1560_p0 = pneg %p1777_p12 }
  0x19   : > { %p1561_p1 = pnand %p1560_p0, %p1559_p13 }
  0x1b   : > { %p1562_p2 = pneg %p1561_p1 }
  0x1d   : > { %p1567_p4 = pnand %p1565_p3, %p1562_p2 }
  0x1f   : > { %1570 = shalt.err (!%p1567_p4)
}
  0x20   : > { %s1571_s26 = scalar_lea.vmem %s311_s12, 4096  ;;  %p1579_p9 = scmp.lt.s32.totalorder %s311_s12, %s311_s12 }
  0x21   : > { %p1572_p7 = scmp.ne.s32.totalorder %s311_s12, %s1571_s26  ;;  %p1580_p6 = scmp.lt.s32.totalorder %s1571_s26, %s1571_s26 }
  0x23   : > { %p1574_p8 = pnand %p1572_p7, %p1560_p0  ;;  %p1581_p5 = por %p1580_p6, %p1579_p9 }
  0x25   : > { %p1575_p11 = pneg %p1574_p8 }
  0x27   : > { %p1582_p10 = pnand %p1581_p5, %p1575_p11 }
  0x29   : > { %1585 = shalt.err (!%p1582_p10)
}
  0x2a   : > { %s1655_s14 = smov 64   ;;  %s1656_s15 = smov 4  }
  0x2b   : > { %1468 = dma.hbm_to_vmem [thread:$0]  (!%p1777_p12), %s1983_s3, 4096, %s311_s12, [#allocation3], %s1655_s14, %s1655_s14, %s1656_s15  }
  0x2c   : > { %p2000_p13 = scmp.ne.s32.totalorder %s1998_s29, 0 }
  0x2d   : > { %p2001_p1 = scmp.eq.s32.totalorder (!%p2000_p13), %s1741_s21, 0 }
  0x2e   : > { %354 = sbr.rel (%p2000_p13) target bundleno = 1605 (0x645), region = 64 }
  0x35   : > { %1631 = dma.done.wait (%p2001_p1), [#allocation3], 4096   ;;  %p2002_p0 = pmov %p2001_p1 }
  0x36   : > { %p393_p5 = scmp.lt.s32.totalorder %s1741_s21, 1  ;;  %v1657_v0 = vmov 0.0   ;;  %vm1658_vm0 = vmmov 0   ;;  %v1513_v1 = vld [vmem:[%s1981_s1] sm:$0xff]   ;;  %vm415_vm1 = vcmask 130048   ;;  %v1515_v5 = vld [vmem:[#allocation2 + $0x8] sm:$0xff]  }
  0x37   : > { %1633 = vsyncadd (%p2002_p0), [#allocation3], 4294963200  ;;  %1341 = vmatprep.subr.bf16.mxu0 %v1657_v0  ;;  %1343 = vmatprep.mubr.msk.bf16.mxu0 %vm1658_vm0, %v1657_v0  ;;  %v1514_v4 = vld [vmem:[#allocation2] sm:$0xff]   ;;  %v1516_v6 = vld [vmem:[#allocation2 + $0x10] sm:$0xff]   ;;  %vm1088_vm2 = vcmask 523264   ;;  %s390_s13 = sand.u32 1, %s1644_s18  }
  0x38   : > { %s394_s26 = scalar_select %p393_p5, %s1741_s21, 1  ;;  %1347 = vmatprep.subr.bf16.mxu1 %v1657_v0  ;;  %1363 = vmatprep.mubr.msk.bf16.mxu1 %vm1658_vm0, %v1657_v0  ;;  %v1517_v7 = vld [vmem:[#allocation2 + $0x18] sm:$0xff]   ;;  %v1518_v8 = vld [vmem:[#allocation2 + $0x20] sm:$0xff]   ;;  %v1519_v9 = vld [vmem:[#allocation2 + $0x28] sm:$0xff]  }
  0x39   : > { %1342 = vmatpush3.bf16.msra.mxu0 %v1513_v1  ;;  %1348 = vmatpush3.bf16.msra.mxu1 %v1514_v4  ;;  %v1520_v10 = vld [vmem:[#allocation2 + $0x30] sm:$0xff]   ;;  %v1521_v11 = vld [vmem:[#allocation2 + $0x38] sm:$0xff]   ;;  %v1522_v12 = vld [vmem:[#allocation2 + $0x40] sm:$0xff]   ;;  %s1286_s14 = sshll.u32 %s1741_s21, 7  ;;  %s1134_s12 = scalar_lea.sflag [#allocation4], %s390_s13 }
  0x3a   : > { %s1225_s29 = sshll.u32 %s394_s26, 3  ;;  %1367 = vmatprep.subr.bf16.mxu0 %v1657_v0  ;;  %1349 = vmatprep.subr.bf16.mxu1 %v1657_v0  ;;  %v1523_v13 = vld [vmem:[#allocation2 + $0x48] sm:$0xff]   ;;  %v1524_v14 = vld [vmem:[#allocation2 + $0x50] sm:$0xff]   ;;  %v1525_v15 = vld [vmem:[#allocation2 + $0x58] sm:$0xff]   ;;  %p2003_p9 = scmp.ne.s32.totalorder %s1996_s27, 0 }
  0x3b   : > { %s396_s16 = scalar_lea.vmem %s1980_s0, %s1225_s29  ;;  %v1526_v16 = vld [vmem:[#allocation2 + $0x60] sm:$0xff]   ;;  %v1527_v17 = vld [vmem:[#allocation2 + $0x68] sm:$0xff]   ;;  %v1528_v26 = vld [vmem:[#allocation2 + $0x70] sm:$0xff]   ;;  %s1938_s29 = scalar_lea.hbm %s1991_s11, %s1286_s14 }
  0x3c   : > { %v398_v2 = vld [vmem:[%s396_s16] sm:$0xff]  ;;  %v1529_v27 = vld [vmem:[#allocation2 + $0x78] sm:$0xff]   ;;  %v1531_v29 = vld [vmem:[#allocation2 + $0x88] sm:$0xff]   ;;  %s1224_s16 = sshll.u32 %s390_s13, 3 }
  0x3d   : > { %v399_v3 = vpack.c.bf16 %v398_v2, %v398_v2  ;;  %1350 = vmatpush3.bf16.msra.mxu1 %v1515_v5  ;;  %v1226_v18 = vld [vmem:[%s1982_s2] ss:$0 sm:$0xff]  ;;  %v1532_v30 = vld [vmem:[#allocation2 + $0x90] sm:$0xff]   ;;  %v1533_v31 = vld [vmem:[#allocation2 + $0x98] sm:$0xff]   ;;  %s392_s15 = scalar_lea.vmem [#allocation5], %s1224_s16  ;;  %s1659_s16 = smov [#allocation5]  }
  0x3e   : > { %1351 = vmatprep.subr.bf16.mxu1 %v1657_v0  ;;  %v1530_v28 = vld [vmem:[#allocation2 + $0x80] sm:$0xff]   ;;  %v1535_v33 = vld [vmem:[#allocation2 + $0xa8] sm:$0xff]   ;;  %v1536_v42 = vld [vmem:[#allocation2 + $0xb0] sm:$0xff]   ;;  %s1147_s22 = sshll.u32 %s392_s15, 4  ;;  %s1590_s25 = sshll.u32 %s1659_s16, 4  ;;  %s1940_s22 = int_to_ptr.vmem [resolvable:$true] %s1147_s22  ;;  %s1591_s25 = int_to_ptr.vmem [resolvable:$false] %s1590_s25 }
  0x3f   : > { %1344 = vmatmul.mubr.msk.bf16.vlgmr.msra.gmra.mrb[0].mxu0 %vm415_vm1, %v399_v3  ;;  %v1534_v32 = vld [vmem:[#allocation2 + $0xa0] sm:$0xff]   ;;  %v1537_v43 = vld [vmem:[#allocation2 + $0xb8] sm:$0xff]   ;;  %v1539_v45 = vld [vmem:[#allocation2 + $0xc8] sm:$0xff]   ;;  %s1586_s21 = scalar_lea.vmem %s1940_s22, 128  ;;  %s1592_s30 = scalar_lea.vmem %s1591_s25, 256 }
  0x40   : > { %1383 = vmatprep.mubr.msk.bf16.mxu0 %vm1658_vm0, %v1657_v0  ;;  %1368 = vmatpush3.bf16.msra.mxu0 %v1522_v12  ;;  %v1229_v34 = vld [vmem:[%s1984_s4] ss:$0 sm:$0xff]  ;;  %v1540_v46 = vld [vmem:[#allocation2 + $0xd0] sm:$0xff]   ;;  %v1541_v47 = vld [vmem:[#allocation2 + $0xd8] sm:$0xff]   ;;  %p1587_p6 = scmp.ne.s32.totalorder %s1940_s22, %s1586_s21  ;;  %p1593_p2 = scmp.lt.s32.totalorder %s1940_s22, %s1591_s25 }
  0x41   : > { %1352 = vmatpush3.bf16.msra.mxu1 %v1516_v6  ;;  %1369 = vmatprep.subr.bf16.mxu0 %v1657_v0  ;;  %v1538_v44 = vld [vmem:[#allocation2 + $0xc0] sm:$0xff]   ;;  %v1543_v49 = vld [vmem:[#allocation2 + $0xe8] sm:$0xff]   ;;  %v1544_v58 = vld [vmem:[#allocation2 + $0xf0] sm:$0xff]   ;;  %p1594_p3 = scmp.lt.s32.totalorder %s1592_s30, %s1586_s21 }
  0x42   : > { %1353 = vmatprep.subr.bf16.mxu1 %v1657_v0  ;;  %v1542_v48 = vld [vmem:[#allocation2 + $0xe0] sm:$0xff]   ;;  %v1545_v59 = vld [vmem:[#allocation2 + $0xf8] sm:$0xff]   ;;  %v1547_v61 = vld [vmem:[%s1987_s7 + $0x8] sm:$0xff]   ;;  %p1588_p10 = pnand %p1587_p6, %p2003_p9 }
  0x43   : > { %v1239_v50 = vld [vmem:[%s1984_s4 + $0x1] ss:$0 sm:$0xff]  ;;  %v1548_v62 = vld [vmem:[%s1987_s7 + $0x10] sm:$0xff]   ;;  %v1549_v63 = vld [vmem:[%s1987_s7 + $0x18] sm:$0xff]   ;;  %p1595_p4 = por %p1594_p3, %p1593_p2 }
  0x44   : > { %1370 = vmatpush3.bf16.msra.mxu0 %v1523_v13  ;;  %v1546_v60 = vld [vmem:[%s1987_s7] sm:$0xff]   ;;  %v1553_v12 = vld [vmem:[%s1987_s7 + $0x38] sm:$0xff]   ;;  %p1589_p12 = pneg %p1588_p10 }
  0x45   : > { %1354 = vmatpush3.bf16.msra.mxu1 %v1517_v7  ;;  %1371 = vmatprep.subr.bf16.mxu0 %v1657_v0  ;;  %v1550_v1 = vld [vmem:[%s1987_s7 + $0x20] sm:$0xff]  }
  0x46   : > { %1355 = vmatprep.subr.bf16.mxu1 %v1657_v0  ;;  %v1249_v2 = vld [vmem:[%s1984_s4 + $0x2] ss:$0 sm:$0xff]  ;;  %p1596_p7 = pnand %p1595_p4, %p1589_p12 }
  0x47   : > { %v1554_v13 = vld [vmem:[%s1989_s9] sm:$0xff]  }
  0x48   : > { %1372 = vmatpush3.bf16.msra.mxu0 %v1524_v14  ;;  %v1555_v14 = vld [vmem:[%s1989_s9 + $0x8] sm:$0xff]  }
  0x49   : > { %1356 = vmatpush3.bf16.msra.mxu1 %v1518_v8  ;;  %1373 = vmatprep.subr.bf16.mxu0 %v1657_v0 }
  0x4a   : > { %1357 = vmatprep.subr.bf16.mxu1 %v1657_v0 }
  0x4c   : > { %1374 = vmatpush3.bf16.msra.mxu0 %v1525_v15  ;;  %v1259_v15 = vld [vmem:[%s1984_s4 + $0x3] ss:$0 sm:$0xff] }
  0x4d   : > { %1358 = vmatpush3.bf16.msra.mxu1 %v1519_v9  ;;  %1375 = vmatprep.subr.bf16.mxu0 %v1657_v0 }
  0x4e   : > { %1359 = vmatprep.subr.bf16.mxu1 %v1657_v0 }
  0x50   : > { %1376 = vmatpush3.bf16.msra.mxu0 %v1526_v16 }
  0x51   : > { %1360 = vmatpush3.bf16.msra.mxu1 %v1520_v10  ;;  %1377 = vmatprep.subr.bf16.mxu0 %v1657_v0  ;;  %v1551_v10 = vld [vmem:[%s1987_s7 + $0x28] sm:$0xff]  }
  0x52   : > { %1361 = vmatprep.subr.bf16.mxu1 %v1657_v0 }
  0x54   : > { %1378 = vmatpush3.bf16.msra.mxu0 %v1527_v17 }
  0x55   : > { %1362 = vmatpush3.bf16.msra.mxu1 %v1521_v11  ;;  %1379 = vmatprep.subr.bf16.mxu0 %v1657_v0  ;;  %v1552_v11 = vld [vmem:[%s1987_s7 + $0x30] sm:$0xff]  }
  0x56   : > { %1387 = vmatprep.subr.bf16.mxu1 %v1657_v0 }
  0x58   : > { %1380 = vmatpush3.bf16.msra.mxu0 %v1528_v26 }
  0x59   : > { %1381 = vmatprep.subr.bf16.mxu0 %v1657_v0 }
  0x5c   : > { %1382 = vmatpush3.bf16.msra.mxu0 %v1529_v27 }
  0x5d   : > { %1407 = vmatprep.subr.bf16.mxu0 %v1657_v0 }
 0x112   : > { %v453_v19 = vpop.f32.mrb[0].mxu0 }
 0x113   : > { %v454_v20 = vadd.f32 %v1226_v18, %v453_v19  ;;  %v1345_v21 = vpop.f32.mrb[1].mxu0  ;;  %v1268_v19 = vld [vmem:[%s1985_s5] ss:$0 sm:$0xff] }
 0x114   : > { %v456_v22 = vpop.f32.mrb[2].mxu0 }
 0x115   : > { %v459_v23 = vmax.f32 %v454_v20, 0.0  ;;  %v1346_v24 = vpop.f32.mrb[3].mxu0 }
 0x117   : > { %v460_v25 = vpack.c.bf16 %v459_v23, %v459_v23  ;;  %v1269_v23 = vld [vmem:[%s1986_s6] ss:$0 sm:$0xff] }
 0x119   : > { %1364 = vmatmul.mubr.bf16.vlgmr.msra.gmra.mrb[0].mxu1 %v460_v25 }
 0x11a   : > { %1403 = vmatprep.mubr.msk.bf16.mxu1 %vm1658_vm0, %v1657_v0  ;;  %1388 = vmatpush3.bf16.msra.mxu1 %v1530_v28  ;;  %v1556_v28 = vld [vmem:[%s1989_s9 + $0x10] sm:$0xff]  }
 0x11b   : > { %1389 = vmatprep.subr.bf16.mxu1 %v1657_v0 }
 0x11e   : > { %1390 = vmatpush3.bf16.msra.mxu1 %v1531_v29  ;;  %v1557_v29 = vld [vmem:[%s1989_s9 + $0x18] sm:$0xff]  }
 0x11f   : > { %1391 = vmatprep.subr.bf16.mxu1 %v1657_v0 }
 0x122   : > { %1392 = vmatpush3.bf16.msra.mxu1 %v1532_v30  ;;  %v1270_v30 = vld [vmem:[%s1988_s8] ss:$0 sm:$0xff] }
 0x123   : > { %1393 = vmatprep.subr.bf16.mxu1 %v1657_v0 }
 0x126   : > { %1394 = vmatpush3.bf16.msra.mxu1 %v1533_v31 }
 0x127   : > { %1395 = vmatprep.subr.bf16.mxu1 %v1657_v0 }
 0x12a   : > { %1396 = vmatpush3.bf16.msra.mxu1 %v1534_v32 }
 0x12b   : > { %1397 = vmatprep.subr.bf16.mxu1 %v1657_v0 }
 0x12e   : > { %1398 = vmatpush3.bf16.msra.mxu1 %v1535_v33 }
 0x12f   : > { %1399 = vmatprep.subr.bf16.mxu1 %v1657_v0 }
 0x132   : > { %1400 = vmatpush3.bf16.msra.mxu1 %v1536_v42 }
 0x133   : > { %1401 = vmatprep.subr.bf16.mxu1 %v1657_v0 }
 0x136   : > { %1402 = vmatpush3.bf16.msra.mxu1 %v1537_v43 }
 0x137   : > { %1427 = vmatprep.subr.bf16.mxu1 %v1657_v0 }
 0x1ec   : > { %v566_v35 = vpop.f32.mrb[0].mxu1 }
 0x1ed   : > { %v567_v36 = vadd.f32 %v1229_v34, %v566_v35  ;;  %v1365_v37 = vpop.f32.mrb[1].mxu1 }
 0x1ee   : > { %v569_v38 = vpop.f32.mrb[2].mxu1 }
 0x1ef   : > { %v572_v39 = vmax.f32 %v567_v36, 0.0  ;;  %v1366_v40 = vpop.f32.mrb[3].mxu1 }
 0x1f1   : > { %v573_v41 = vpack.c.bf16 %v572_v39, %v572_v39 }
 0x1f3   : > { %1384 = vmatmul.mubr.bf16.vlgmr.msra.gmra.mrb[4].mxu0 %v573_v41 }
 0x1f4   : > { %1423 = vmatprep.mubr.msk.bf16.mxu0 %vm1658_vm0, %v1657_v0  ;;  %1408 = vmatpush3.bf16.msra.mxu0 %v1538_v44 }
 0x1f5   : > { %1409 = vmatprep.subr.bf16.mxu0 %v1657_v0 }
 0x1f8   : > { %1410 = vmatpush3.bf16.msra.mxu0 %v1539_v45 }
 0x1f9   : > { %1411 = vmatprep.subr.bf16.mxu0 %v1657_v0 }
 0x1fc   : > { %1412 = vmatpush3.bf16.msra.mxu0 %v1540_v46 }
 0x1fd   : > { %1413 = vmatprep.subr.bf16.mxu0 %v1657_v0 }
 0x200   : > { %1414 = vmatpush3.bf16.msra.mxu0 %v1541_v47 }
 0x201   : > { %1415 = vmatprep.subr.bf16.mxu0 %v1657_v0 }
 0x204   : > { %1416 = vmatpush3.bf16.msra.mxu0 %v1542_v48 }
 0x205   : > { %1417 = vmatprep.subr.bf16.mxu0 %v1657_v0 }
 0x208   : > { %1418 = vmatpush3.bf16.msra.mxu0 %v1543_v49 }
 0x209   : > { %1419 = vmatprep.subr.bf16.mxu0 %v1657_v0 }
 0x20c   : > { %1420 = vmatpush3.bf16.msra.mxu0 %v1544_v58 }
 0x20d   : > { %1421 = vmatprep.subr.bf16.mxu0 %v1657_v0 }
 0x210   : > { %1422 = vmatpush3.bf16.msra.mxu0 %v1545_v59 }
 0x211   : > { %1447 = vmatprep.subr.bf16.mxu0 %v1657_v0 }
 0x2c6   : > { %v681_v51 = vpop.f32.mrb[4].mxu0 }
 0x2c7   : > { %v682_v52 = vadd.f32 %v1239_v50, %v681_v51  ;;  %v1385_v53 = vpop.f32.mrb[5].mxu0 }
 0x2c8   : > { %v684_v54 = vpop.f32.mrb[6].mxu0 }
 0x2c9   : > { %v687_v55 = vmax.f32 %v682_v52, 0.0  ;;  %v1386_v56 = vpop.f32.mrb[7].mxu0 }
 0x2cb   : > { %v688_v57 = vpack.c.bf16 %v687_v55, %v687_v55 }
 0x2cd   : > { %1404 = vmatmul.mubr.bf16.vlgmr.msra.gmra.mrb[4].mxu1 %v688_v57 }
 0x2ce   : > { %1443 = vmatprep.mubr.msk.bf16.mxu1 %vm1658_vm0, %v1657_v0  ;;  %1428 = vmatpush3.bf16.msra.mxu1 %v1546_v60 }
 0x2cf   : > { %1429 = vmatprep.subr.bf16.mxu1 %v1657_v0 }
 0x2d2   : > { %1430 = vmatpush3.bf16.msra.mxu1 %v1547_v61 }
 0x2d3   : > { %1431 = vmatprep.subr.bf16.mxu1 %v1657_v0 }
 0x2d6   : > { %1432 = vmatpush3.bf16.msra.mxu1 %v1548_v62 }
 0x2d7   : > { %1433 = vmatprep.subr.bf16.mxu1 %v1657_v0 }
 0x2da   : > { %1434 = vmatpush3.bf16.msra.mxu1 %v1549_v63 }
 0x2db   : > { %1435 = vmatprep.subr.bf16.mxu1 %v1657_v0 }
 0x2de   : > { %1436 = vmatpush3.bf16.msra.mxu1 %v1550_v1 }
 0x2df   : > { %1437 = vmatprep.subr.bf16.mxu1 %v1657_v0 }
 0x2e2   : > { %1438 = vmatpush3.bf16.msra.mxu1 %v1551_v10 }
 0x2e3   : > { %1439 = vmatprep.subr.bf16.mxu1 %v1657_v0 }
 0x2e6   : > { %1440 = vmatpush3.bf16.msra.mxu1 %v1552_v11 }
 0x2e7   : > { %1441 = vmatprep.subr.bf16.mxu1 %v1657_v0 }
 0x2ea   : > { %1442 = vmatpush3.bf16.msra.mxu1 %v1553_v12 }
 0x3a0   : > { %v796_v3 = vpop.f32.mrb[4].mxu1 }
 0x3a1   : > { %v797_v4 = vadd.f32 %v1249_v2, %v796_v3  ;;  %v1405_v5 = vpop.f32.mrb[5].mxu1 }
 0x3a2   : > { %v799_v6 = vpop.f32.mrb[6].mxu1 }
 0x3a3   : > { %v802_v7 = vmax.f32 %v797_v4, 0.0  ;;  %v1406_v8 = vpop.f32.mrb[7].mxu1 }
 0x3a5   : > { %v803_v9 = vpack.c.bf16 %v802_v7, %v802_v7 }
 0x3a7   : > { %1424 = vmatmul.mubr.bf16.vlgmr.msra.gmra.mrb[8].mxu0 %v803_v9 }
 0x3a8   : > { %1455 = vmatprep.mubr.msk.bf16.mxu0 %vm1658_vm0, %v1657_v0  ;;  %1448 = vmatpush3.bf16.msra.mxu0 %v1554_v13 }
 0x3a9   : > { %1449 = vmatprep.subr.bf16.mxu0 %v1657_v0 }
 0x3ac   : > { %1450 = vmatpush3.bf16.msra.mxu0 %v1555_v14 }
 0x3ad   : > { %1451 = vmatprep.subr.bf16.mxu0 %v1657_v0 }
 0x3b0   : > { %1452 = vmatpush3.bf16.msra.mxu0 %v1556_v28 }
 0x3b1   : > { %1453 = vmatprep.subr.bf16.mxu0 %v1657_v0  ;;  %v1279_v0 = vld [vmem:[%s1990_s10] ss:$0 sm:$0xff] }
 0x3b4   : > { %1454 = vmatpush3.bf16.msra.mxu0 %v1557_v29 }
 0x47a   : > { %v911_v16 = vpop.f32.mrb[8].mxu0 }
 0x47b   : > { %v912_v17 = vadd.f32 %v1259_v15, %v911_v16  ;;  %v1425_v18 = vpop.f32.mrb[9].mxu0 }
 0x47c   : > { %v914_v20 = vpop.f32.mrb[10].mxu0 }
 0x47d   : > { %v917_v21 = vmax.f32 %v912_v17, 0.0  ;;  %v1426_v22 = vpop.f32.mrb[11].mxu0 }
 0x47f   : > { %v925_v24 = vmul.f32 %v1268_v19, %v917_v21 }
 0x481   : > { %v933_v25 = vadd.f32 %v1269_v23, %v925_v24 }
 0x483   : > { %v934_v26 = vmax.f32 %v933_v25, 0.0 }
 0x485   : > { %v935_v27 = vpack.c.bf16 %v934_v26, %v934_v26 }
 0x487   : > { %1444 = vmatmul.mubr.bf16.vlgmr.msra.gmra.mrb[8].mxu1 %v935_v27 }
 0x55a   : > { %v1041_v31 = vpop.f32.mrb[8].mxu1 }
 0x55b   : > { %v1042_v32 = vadd.f32 %v1270_v30, %v1041_v31  ;;  %v1445_v33 = vpop.f32.mrb[9].mxu1 }
 0x55c   : > { %v1044_v34 = vpop.f32.mrb[10].mxu1 }
 0x55d   : > { %v1047_v35 = vmax.f32 %v1042_v32, 0.0  ;;  %v1446_v36 = vpop.f32.mrb[11].mxu1 }
 0x55f   : > { %v1048_v37 = vpack.c.bf16 %v1047_v35, %v1047_v35 }
 0x561   : > { %1456 = vmatmul.mubr.msk.bf16.vlgmr.msra.gmra.mrb[12].mxu0 %vm1088_vm2, %v1048_v37 }
 0x634   : > { %v1126_v38 = vpop.f32.mrb[12].mxu0 }
 0x635   : > { %v1127_v39 = vadd.f32 %v1279_v0, %v1126_v38  ;;  %v1457_v40 = vpop.f32.mrb[13].mxu0 }
 0x636   : > { %v1129_v41 = vpop.f32.mrb[14].mxu0 }
 0x637   : > { %1132 = vst [vmem:[%s392_s15] sm:$0xff] %v1127_v39  ;;  %v1458_v42 = vpop.f32.mrb[15].mxu0 }
 0x638   : > { %1599 = shalt.err (!%p1596_p7)
}
 0x639   : > { %s1600_s13 = scalar_lea.hbm %s1938_s29, 128  ;;  %s1604_s24 = scalar_lea.hbm %s1991_s11, 256 }
 0x63a   : > { %p1601_p8 = scmp.ne.s32.totalorder %s1938_s29, %s1600_s13  ;;  %p1605_p1 = scmp.lt.u32.totalorder %s1938_s29, %s1991_s11 }
 0x63b   : > { %p1606_p0 = scmp.lt.u32.totalorder %s1604_s24, %s1600_s13  ;;  %p1608_p6 = scmp.lt.u32.totalorder %s1600_s13, %s1938_s29 }
 0x63c   : > { %p1602_p11 = pnand %p1601_p8, %p2003_p9 }
 0x63d   : > { %p1607_p5 = por %p1606_p0, %p1605_p1 }
 0x63e   : > { %p1603_p13 = pneg %p1602_p11 }
 0x63f   : > { %p1609_p10 = por %p1608_p6, %p1607_p5 }
 0x641   : > { %p1610_p12 = pnand %p1609_p10, %p1603_p13 }
 0x643   : > { %1613 = shalt.err (!%p1610_p12)
}
 0x644   : > { %1463 = dma.vmem_to_hbm [thread:$0]  (%p2003_p9), %s1940_s22, 128, %s1938_s29, %s1134_s12  }
 0x645 PF: > { %p1475_p2 = scmp.ge.s32.totalorder %s1652_s20, 2  ;;  %s1159_s21 = sand.u32 1, %s1640_s17  }
 0x646   : > { %p2004_p3 = scmp.ne.s32.totalorder %s1997_s28, 0  ;;  %s1160_s25 = scalar_lea.sflag [#allocation4], %s1159_s21 }
 0x648   : > { %p1470_p4 = pnand %p1475_p2, %p2004_p3 }
 0x64a   : > { %1635 = dma.done.wait (!%p1470_p4), %s1160_s25, 128  }
 0x64b   : > { %1637 = vsyncadd (!%p1470_p4), %s1160_s25, 4294967168  ;;  %s2005_s30 = sld [smem:[#allocation8_spill]]  ;;  %p22_p7 = scmp.ge.s32.totalorder %s1745_s23, 4  }
 0x64c   : > { %s2006_s17 = smov %s1644_s18  ;;  %s2007_s18 = smov %s1648_s19 }
 0x64d   : > { %s2009_s20 = smov %s1745_s23  ;;  %24 = sbr.rel (!%p22_p7) target bundleno = 4 (0x4), region = 110 }
 0x651   : > { %s2008_s19 = smov %s2005_s30 }
 0x654   :  { %1165 = vsyncpa [#allocation3], 1 }
 0x655   :  { %1167 = vsyncpa [#allocation3 + $0x1], 1 }
 0x656   :  { %1168 = vsyncpa [#allocation4], 1 }
 0x657   :  { %1170 = vsyncpa [#allocation4 + $0x1], 1 }

</bundles_post_ra>
